<compile_context>
chip_gen: v7x
topology: tpu7x:2x2x1
jax: 0.10.0
libtpu: 0.0.40
codegen_flags: <defaults>
</compile_context>

<pallas_src>
import functools

import jax
import jax.numpy as jnp
from jax.experimental import pallas as pl
from jax.experimental.pallas import tpu as pltpu


def _nce_kernel(x_ref, t_ref, out_ref, *, n_rows, tm, needs_mask):
    x = x_ref[...].astype(jnp.float32)
    t = t_ref[...].astype(jnp.float32)

    if needs_mask:
        # Ragged last tile: out-of-bounds rows contain unspecified data, so
        # mask BOTH x and t before any arithmetic (garbage x could be Inf/NaN).
        i = pl.program_id(0)
        row = jax.lax.broadcasted_iota(jnp.int32, (tm, 1), 0)
        in_bounds = (i * tm + row) < n_rows
        x = jnp.where(in_bounds, x, 0.0)
        t = jnp.where(in_bounds, t, 0.0)

    # Numerically stable row-wise logsumexp.
    m = jnp.max(x, axis=-1, keepdims=True)
    lse = jnp.log(jnp.sum(jnp.exp(x - m), axis=-1, keepdims=True))

    # -sum(log_softmax(x) * t) == sum_r [ sum_c(t) * (m + lse) - sum_c(t * x) ]
    sum_t = jnp.sum(t, axis=-1, keepdims=True)
    sum_tx = jnp.sum(t * x, axis=-1, keepdims=True)
    partial = jnp.sum(sum_t * (m + lse) - sum_tx)

    # Lane-dense per-tile output block; wrapper reads [tile, 0, 0] and sums.
    out_ref[...] = jnp.full(out_ref.shape, partial, dtype=jnp.float32)


def _choose_block_rows(n, c, itemsize, sublane, vmem_cap_bytes):
    # Per-input, per-pipeline-buffer budget:
    #   ~8 MiB on 128 MiB VMEM parts (v5e/v6e), ~4 MiB on 64 MiB parts (v7x).
    # 2 inputs x 2 pipeline buffers => 32 MiB / 16 MiB of streaming buffers.
    budget_bytes = (8 << 20) if vmem_cap_bytes >= (96 << 20) else (4 << 20)
    tm = budget_bytes // max(c * itemsize, 1)
    tm = max(sublane, (tm // sublane) * sublane)
    # Never bigger than (sublane-rounded-up) N: one tile covers everything.
    n_up = pl.cdiv(n, sublane) * sublane
    return min(tm, n_up)


def naive_cross_entropy_loss(inputs, target, size_average=True, block_rows=None):
    assert inputs.shape == target.shape and inputs.ndim == 2
    n, c = inputs.shape
    itemsize = jnp.dtype(inputs.dtype).itemsize
    # Native sublane tile: 8 rows for 32-bit, 16 for bf16, 32 for 8-bit dtypes.
    sublane = max(8, 32 // max(itemsize, 1))

    try:
        vmem_cap = int(
            getattr(pltpu.get_tpu_info(), "vmem_capacity_bytes", 64 << 20)
        )
    except Exception:  # pragma: no cover - conservative fallback
        vmem_cap = 64 << 20

    tm = (
        block_rows
        if block_rows is not None
        else _choose_block_rows(n, c, itemsize, sublane, vmem_cap)
    )
    assert tm % sublane == 0, (
        f"block_rows must be a multiple of {sublane} for dtype {inputs.dtype}"
    )

    num_tiles = pl.cdiv(n, tm)
    needs_mask = (n % tm) != 0  # ragged last tile -> in-kernel row mask

    kernel = functools.partial(
        _nce_kernel, n_rows=n, tm=tm, needs_mask=needs_mask
    )

    # Explicit VMEM budget: 2 inputs x 2 pipeline buffers of (tm, c) + output
    # double-buffer + headroom, clamped below the generation's physical VMEM
    # (96 MiB ceiling on 128 MiB parts, 48 MiB ceiling on 64 MiB v7x).
    needed = 4 * tm * c * itemsize + 2 * 8 * 128 * 4 + (2 << 20)
    hard_cap = (96 << 20) if vmem_cap >= (96 << 20) else (48 << 20)
    vmem_limit = int(min(max(needed, 32 << 20), hard_cap))

    cost = pl.CostEstimate(
        flops=5 * n * c,
        transcendentals=n * c,
        bytes_accessed=2 * n * c * itemsize + num_tiles * 8 * 128 * 4,
    )

    # TODO(synk): for vocab-scale C (a single (tm, C) row tile no longer fits
    # the VMEM budget), add a second "arbitrary" class-chunk grid axis with an
    # online logsumexp accumulator.
    partials = pl.pallas_call(
        kernel,
        out_shape=jax.ShapeDtypeStruct((num_tiles, 8, 128), jnp.float32),
        grid_spec=pltpu.PrefetchScalarGridSpec(
            num_scalar_prefetch=0,
            grid=(num_tiles,),
            in_specs=[
                pl.BlockSpec((tm, c), lambda i: (i, 0)),
                pl.BlockSpec((tm, c), lambda i: (i, 0)),
            ],
            out_specs=pl.BlockSpec((1, 8, 128), lambda i: (i, 0, 0)),
        ),
        compiler_params=pltpu.CompilerParams(
            dimension_semantics=("parallel",),
            vmem_limit_bytes=vmem_limit,
        ),
        cost_estimate=cost,
    )(inputs, target)

    loss = jnp.sum(partials[:, 0, 0])
    if size_average:
        loss = loss / jnp.float32(n)
    return loss


def _reference(inputs, target, size_average=True):
    logp = jax.nn.log_softmax(inputs.astype(jnp.float32), axis=1)
    loss = -jnp.sum(logp * target.astype(jnp.float32))
    return loss / inputs.shape[0] if size_average else loss


if __name__ == "__main__":
    key = jax.random.PRNGKey(0)
    k1, k2, k3, k4 = jax.random.split(key, 4)

    # Case 1: small tile-divisible f32 run (single tile, no masking).
    N1, C1 = 8, 128
    x1 = jax.random.normal(k1, (N1, C1), dtype=jnp.float32)
    t1 = jax.nn.softmax(jax.random.normal(k2, (N1, C1), dtype=jnp.float32), axis=1)
    loss1 = jax.block_until_ready(naive_cross_entropy_loss(x1, t1, size_average=True))
    ref1 = _reference(x1, t1, size_average=True)
    assert jnp.allclose(loss1, ref1, rtol=1e-5, atol=1e-5), (loss1, ref1)

    # Case 2: ragged N (in-kernel mask on the last tile), multi-tile parallel
    # partials, bf16 inputs (16-row sublane alignment), size_average=False.
    N2, C2 = 50, 96
    x2 = jax.random.normal(k3, (N2, C2), dtype=jnp.float32).astype(jnp.bfloat16)
    t2 = jax.nn.softmax(
        jax.random.normal(k4, (N2, C2), dtype=jnp.float32), axis=1
    ).astype(jnp.bfloat16)
    loss2 = jax.block_until_ready(
        naive_cross_entropy_loss(x2, t2, size_average=False, block_rows=16)
    )
    ref2 = _reference(x2, t2, size_average=False)
    assert jnp.allclose(loss2, ref2, rtol=1e-3, atol=1e-2), (loss2, ref2)

    print("KERNEL_OK")
</pallas_src>

<mosaic_0001>
module attributes {stable_mosaic.version = 11 : i64} {
  func.func @_nce_kernel(%arg0: i32, %arg1: memref<8x128xf32, #tpu.memory_space<vmem>>, %arg2: memref<8x128xf32, #tpu.memory_space<vmem>>, %arg3: memref<1x8x128xf32, #tpu.memory_space<vmem>>) attributes {dimension_semantics = [#tpu.dimension_semantics<parallel>], iteration_bounds = array<i64: 1>, scalar_prefetch = 0 : i64, scratch_operands = 0 : i64, tpu.core_type = #tpu.core_type<tc>, window_params = [{transform_indices = @transform_0, window_bounds = array<i64: 8, 128>}, {transform_indices = @transform_1, window_bounds = array<i64: 8, 128>}, {transform_indices = @transform_2, window_bounds = array<i64: 1, 8, 128>}]} {
    %c0 = arith.constant 0 : index
    %c0_0 = arith.constant 0 : index
    %0 = vector.load %arg1[%c0, %c0_0] : memref<8x128xf32, #tpu.memory_space<vmem>>, vector<8x128xf32>
    %c0_1 = arith.constant 0 : index
    %c0_2 = arith.constant 0 : index
    %1 = vector.load %arg2[%c0_1, %c0_2] : memref<8x128xf32, #tpu.memory_space<vmem>>, vector<8x128xf32>
    %cst = arith.constant dense<0xFF800000> : vector<8xf32>
    %2 = vector.multi_reduction <maximumf>, %0, %cst [1] : vector<8x128xf32> to vector<8xf32>
    %3 = vector.shape_cast %2 : vector<8xf32> to vector<8x1xf32>
    %4 = vector.broadcast %3 : vector<8x1xf32> to vector<8x128xf32>
    %5 = arith.subf %0, %4 : vector<8x128xf32>
    %6 = math.exp %5 : vector<8x128xf32>
    %cst_3 = arith.constant dense<0.000000e+00> : vector<8xf32>
    %7 = vector.multi_reduction <add>, %6, %cst_3 [1] : vector<8x128xf32> to vector<8xf32>
    %8 = vector.shape_cast %7 : vector<8xf32> to vector<8x1xf32>
    %9 = math.log %8 : vector<8x1xf32>
    %cst_4 = arith.constant dense<0.000000e+00> : vector<8xf32>
    %10 = vector.multi_reduction <add>, %1, %cst_4 [1] : vector<8x128xf32> to vector<8xf32>
    %11 = vector.shape_cast %10 : vector<8xf32> to vector<8x1xf32>
    %12 = arith.mulf %1, %0 : vector<8x128xf32>
    %cst_5 = arith.constant dense<0.000000e+00> : vector<8xf32>
    %13 = vector.multi_reduction <add>, %12, %cst_5 [1] : vector<8x128xf32> to vector<8xf32>
    %14 = vector.shape_cast %13 : vector<8xf32> to vector<8x1xf32>
    %15 = arith.addf %3, %9 : vector<8x1xf32>
    %16 = arith.mulf %11, %15 : vector<8x1xf32>
    %17 = arith.subf %16, %14 : vector<8x1xf32>
    %18 = vector.shape_cast %17 : vector<8x1xf32> to vector<1x8x1xf32>
    %cst_6 = arith.constant dense<0.000000e+00> : vector<1xf32>
    %19 = vector.multi_reduction <add>, %18, %cst_6 [1, 2] : vector<1x8x1xf32> to vector<1xf32>
    %20 = vector.shape_cast %19 : vector<1xf32> to vector<1x1x1xf32>
    %21 = vector.extract %20[0, 0, 0] : f32 from vector<1x1x1xf32>
    %22 = vector.broadcast %21 : f32 to vector<1x8x128xf32>
    %c0_7 = arith.constant 0 : index
    %c0_8 = arith.constant 0 : index
    %c0_9 = arith.constant 0 : index
    %23 = vector.load %arg3[%c0_7, %c0_8, %c0_9] : memref<1x8x128xf32, #tpu.memory_space<vmem>>, vector<1x8x128xf32>
    tpu.vector_store %arg3[%c0_7, %c0_8, %c0_9], %22 {strides = array<i32>} : memref<1x8x128xf32, #tpu.memory_space<vmem>>, vector<1x8x128xf32>,
    return
  }
  func.func @transform_0(%arg0: i32) -> (i32, i32) {
    %c0_i32 = arith.constant 0 : i32
    %c0_i32_0 = arith.constant 0 : i32
    return %arg0, %c0_i32 : i32, i32
  }
  func.func @transform_1(%arg0: i32) -> (i32, i32) {
    %c0_i32 = arith.constant 0 : i32
    %c0_i32_0 = arith.constant 0 : i32
    return %arg0, %c0_i32 : i32, i32
  }
  func.func @transform_2(%arg0: i32) -> (i32, i32, i32) {
    %c0_i32 = arith.constant 0 : i32
    %c0_i32_0 = arith.constant 0 : i32
    %c0_i32_1 = arith.constant 0 : i32
    return %arg0, %c0_i32, %c0_i32_0 : i32, i32, i32
  }
}

</mosaic_0001>

<bundles_post_ra>
// kernel: tpu_custom_call.1
= control target key start
LH: loop header
LB: loop body
LE: loop exit
PB: predicated region body
PF: predicated region fallthrough
CT: control target
= control target key end

     0   :  { %7 = vsyncpa [#allocation3], 0  ;;  %s219_s0 = inlined_call_operand.hbm [shape: f32[8,128], index: 0, kind: input, shape index: {}]   ;;  %s220_s1 = inlined_call_operand.hbm [shape: f32[8,128], index: 1, kind: input, shape index: {}]   ;;  %s221_s2 = inlined_call_operand.hbm [shape: f32[1,8,128], index: 2, kind: output, shape index: {}]  }
   0x1   :  { %8 = vsyncpa [#allocation6], 0 }
   0x2   :  { %9 = vsyncpa [#allocation4], 0  ;;  %s165_s9 = smov [#allocation2]   ;;  %s166_s11 = smov [#allocation5]  }
   0x3   :  { %s16_s10 = sshll.u32 %s165_s9, 4  ;;  %s26_s12 = sshll.u32 %s166_s11, 4  ;;  %s17_s10 = int_to_ptr.vmem [resolvable:$true] %s16_s10  ;;  %s27_s12 = int_to_ptr.vmem [resolvable:$true] %s26_s12 }
   0x4   :  { %s93_s15 = scalar_lea.hbm %s219_s0, 128 }
   0x5   :  { %p94_p0 = scmp.ne.s32.totalorder %s219_s0, %s93_s15  ;;  %p97_p1 = scmp.lt.u32.totalorder %s93_s15, %s219_s0 }
   0x7   :  { %p99_p2 = pnand %p97_p1, %p94_p0 }
   0x9   :  { %102 = shalt.err (!%p99_p2)
}
   0xa   :  { %s103_s20 = scalar_lea.vmem %s17_s10, 128  ;;  %p108_p4 = scmp.lt.s32.totalorder %s17_s10, %s17_s10 }
   0xb   :  { %p104_p3 = scmp.ne.s32.totalorder %s17_s10, %s103_s20  ;;  %p109_p5 = scmp.lt.s32.totalorder %s103_s20, %s103_s20 }
   0xd   :  { %p110_p6 = por %p109_p5, %p108_p4 }
   0xf   :  { %p111_p7 = pnand %p110_p6, %p104_p3 }
  0x11   :  { %114 = shalt.err (!%p111_p7)
}
  0x12   :  { %19 = dma.hbm_to_vmem [thread:$0]  %s219_s0, 128, %s17_s10, [#allocation3]  }
  0x13   :  { %s115_s25 = scalar_lea.hbm %s220_s1, 128 }
  0x14   :  { %p116_p8 = scmp.ne.s32.totalorder %s220_s1, %s115_s25  ;;  %p119_p9 = scmp.lt.u32.totalorder %s115_s25, %s220_s1 }
  0x16   :  { %p121_p10 = pnand %p119_p9, %p116_p8 }
  0x18   :  { %124 = shalt.err (!%p121_p10)
}
  0x19   :  { %s125_s30 = scalar_lea.vmem %s27_s12, 128  ;;  %p130_p12 = scmp.lt.s32.totalorder %s27_s12, %s27_s12 }
  0x1a   :  { %p126_p11 = scmp.ne.s32.totalorder %s27_s12, %s125_s30  ;;  %p131_p13 = scmp.lt.s32.totalorder %s125_s30, %s125_s30 }
  0x1c   :  { %p132_p0 = por %p131_p13, %p130_p12 }
  0x1e   :  { %p133_p1 = pnand %p132_p0, %p126_p11 }
  0x20   :  { %136 = shalt.err (!%p133_p1)
}
  0x21   :  { %29 = dma.hbm_to_vmem [thread:$0]  %s220_s1, 128, %s27_s12, [#allocation6]  }
  0x22   :  { %159 = dma.done.wait [#allocation3], 128  }
  0x23   :  { %160 = vsyncadd [#allocation3], 4294967168 }
  0x24   :  { %161 = dma.done.wait [#allocation6], 128  }
  0x25   :  { %162 = vsyncadd [#allocation6], 4294967168  ;;  %v36_v0 = vld [vmem:[#allocation2] sm:$0xff]  ;;  %v37_v1 = vld [vmem:[#allocation5] sm:$0xff]  ;;  %vm55_vm0 = vcmask 7168   ;;  %s167_s1 = smov [#allocation7]  }
  0x26   :  { %38 = vmax.xlane.f32.xlu0 %v36_v0  ;;  %47 = vadd.xlane.f32.xlu1 %v37_v1  ;;  %v49_v2 = vmul.f32 %v37_v1, %v36_v0  ;;  %s74_s4 = sshll.u32 %s167_s1, 4  ;;  %s75_s4 = int_to_ptr.vmem [resolvable:$true] %s74_s4 }
  0x27   :  { %s137_s6 = scalar_lea.vmem %s75_s4, 128  ;;  %p142_p3 = scmp.lt.s32.totalorder %s75_s4, %s75_s4 }
  0x28   :  { %p138_p2 = scmp.ne.s32.totalorder %s75_s4, %s137_s6  ;;  %p143_p4 = scmp.lt.s32.totalorder %s137_s6, %s137_s6 }
  0x2a   :  { %50 = vadd.xlane.f32.xlu1 %v49_v2  ;;  %p144_p5 = por %p143_p4, %p142_p3 }
  0x2c   :  { %p145_p6 = pnand %p144_p5, %p138_p2 }
  0xb3   :  { %v39_v3 = vpop.xlane.xlu0 %38  ;;  %v48_v8 = vpop.xlane.xlu1 %47 }
  0xb4   :  { %v40_v4 = vsub.f32 %v36_v0, %v39_v3 }
  0xb6   :  { %v41_v5 = vmul.f32 1.442695, %v40_v4 }
  0xb7   :  { %v51_v12 = vpop.xlane.xlu1 %50 }
  0xb8   :  { %89 = vpow2.f32 %v41_v5 }
  0xc2   :  { %v90_v6 = vpop.eup %89 }
  0xc3   :  { %43 = vadd.xlane.f32.xlu0 %v90_v6 }
 0x150   :  { %v44_v7 = vpop.xlane.xlu0 %43 }
 0x151   :  { %91 = vlog2.f32 %v44_v7 }
 0x15b   :  { %v92_v9 = vpop.eup %91 }
 0x15c   :  { %v46_v10 = vmul.f32 0.6931472, %v92_v9 }
 0x15e   :  { %v52_v11 = vadd.f32 %v46_v10, %v39_v3 }
 0x160   :  { %v53_v13 = vmul.f32 %v52_v11, %v48_v8 }
 0x162   :  { %v54_v14 = vsub.f32 %v53_v13, %v51_v12 }
 0x164   :  { %v56_v15 = vsel %vm55_vm0, %v54_v14, 0.0 }
 0x165   :  { %57 = vadd.xlane.f32.xlu0 %v56_v15 }
 0x1f2   :  { %v58_v16 = vpop.xlane.xlu0 %57 }
 0x1f3   :  { %v59_v17 = vrot.slane %v58_v16, 4 }
 0x1f5   :  { %v60_v18 = vadd.f32 %v59_v17, %v58_v16 }
 0x1f7   :  { %v61_v19 = vrot.slane %v60_v18, 2 }
 0x1f9   :  { %v62_v20 = vadd.f32 %v61_v19, %v60_v18 }
 0x1fb   :  { %v63_v21 = vrot.slane %v62_v20, 1 }
 0x1fd   :  { %v64_v22 = vadd.f32 %v63_v21, %v62_v20 }
 0x1ff   :  { %84 = vpush %v64_v22 }
 0x230   :  { %s85_s5 = spop %84 }
 0x231   :  { %v66_v23 = vstv %s85_s5 }
 0x232   :  { %67 = vst [vmem:[#allocation7] sm:$0xff] %v66_v23 }
 0x233   :  { %148 = shalt.err (!%p145_p6)
}
 0x234   :  { %s149_s9 = scalar_lea.hbm %s221_s2, 128 }
 0x235   :  { %p150_p7 = scmp.ne.s32.totalorder %s221_s2, %s149_s9  ;;  %p153_p8 = scmp.lt.u32.totalorder %s149_s9, %s221_s2 }
 0x237   :  { %p155_p9 = pnand %p153_p8, %p150_p7 }
 0x239   :  { %158 = shalt.err (!%p155_p9)
}
 0x23a   :  { %77 = dma.vmem_to_hbm [thread:$0]  %s75_s4, 128, %s221_s2, [#allocation4]  }
 0x23b   :  { %163 = dma.done.wait [#allocation4], 128  }
 0x23c   :  { %164 = vsyncadd [#allocation4], 4294967168 }
 0x23d   :  { %81 = vsyncpa [#allocation3], 1 }
 0x23e   :  { %82 = vsyncpa [#allocation6], 1 }
 0x23f   :  { %83 = vsyncpa [#allocation4], 1 }

</bundles_post_ra>
